<compile_context>
chip_gen: v5e
topology: v5e:2x2
jax: 0.10.0
libtpu: 0.0.40
codegen_flags: <defaults>
</compile_context>

<pallas_src>
from math import log

import jax
import jax.numpy as jnp
from jax.experimental import pallas as pl
from jax.experimental.pallas import tpu as pltpu


def ldm_kernel(beta_ref, x1_ref, edge_ref, band_ref, o_ref):
    """Single-invocation body.

    beta_ref : SMEM (1,) f32
    x1_ref, edge_ref, o_ref : VMEM (B, C, HW) f32
    band_ref : VMEM (C, C) f32, pre-scaled by 1/HW (avg-pool mean folded in)
    """
    x = x1_ref[...] + edge_ref[...]                        # x1 + edge  (LocalAtten == identity)
    pooled = jnp.sum(x, axis=-1)                           # (B, C); 1/HW folded into band matrix
    conv = jnp.dot(pooled, band_ref[...],
                   preferred_element_type=jnp.float32)     # conv1d over channel axis -> (B, C)
    gate = jax.nn.sigmoid(conv)                            # Sigmoid
    beta = beta_ref[0]
    o_ref[...] = beta * gate[:, :, None] + x               # beta * out + x


def make_band_matrix(w, channels):
    """Banded (C, C) matrix M such that pooled @ M == conv1d(pooled, w, pad=(k-1)//2)."""
    k = w.shape[0]
    pad = (k - 1) // 2
    idx = jnp.arange(channels)
    diff = idx[:, None] - idx[None, :] + pad               # M[c_in, c_out] = w[c_in - c_out + pad]
    valid = (diff >= 0) & (diff < k)
    return jnp.where(valid, w[jnp.clip(diff, 0, k - 1)], 0.0).astype(jnp.float32)


def prepare_ldm_band(conv_w, channels, hw):
    """Band matrix with the AdaptiveAvgPool 1/HW folded in.  Compute ONCE, reuse per call."""
    return make_band_matrix(jnp.asarray(conv_w, jnp.float32), channels) * (1.0 / hw)


def ldm_forward(x1, edge, band_scaled, beta):
    """x1, edge: (B, C, H, W) float32; band_scaled from prepare_ldm_band.  Returns (B, C, H, W)."""
    if x1.shape != edge.shape:
        # F.interpolate(..., mode='bilinear', align_corners=False) equivalent (no antialias).
        edge = jax.image.resize(edge, x1.shape, method="bilinear", antialias=False)
    B, C, H, W = x1.shape
    HW = H * W
    x1f = x1.reshape(B, C, HW)
    edgef = edge.reshape(B, C, HW)
    beta_arr = jnp.asarray(beta, jnp.float32).reshape(1)

    out = pl.pallas_call(
        ldm_kernel,
        out_shape=jax.ShapeDtypeStruct((B, C, HW), jnp.float32),
        # No grid: one invocation, whole arrays as single VMEM blocks.
        in_specs=[
            pl.BlockSpec(memory_space=pltpu.SMEM),    # beta (scalar)
            pl.BlockSpec(memory_space=pltpu.VMEM),    # x1   (B, C, HW)
            pl.BlockSpec(memory_space=pltpu.VMEM),    # edge (B, C, HW)
            pl.BlockSpec(memory_space=pltpu.VMEM),    # band (C, C), mean-scaled
        ],
        out_specs=pl.BlockSpec(memory_space=pltpu.VMEM),
    )(beta_arr, x1f, edgef, band_scaled)
    return out.reshape(B, C, H, W)


def ldm_reference(x1, edge, conv_w, beta):
    """Pure-JAX reference mirroring the PyTorch forward."""
    if x1.shape != edge.shape:
        edge = jax.image.resize(edge, x1.shape, method="bilinear", antialias=False)
    x = x1 + edge                                           # + LocalAtten identity
    pooled = x.mean(axis=(2, 3))                            # (B, C)
    k = conv_w.shape[0]
    pad = (k - 1) // 2
    pp = jnp.pad(pooled, ((0, 0), (pad, pad)))
    conv = sum(conv_w[j] * pp[:, j:j + pooled.shape[1]] for j in range(k))
    gate = jax.nn.sigmoid(conv)[:, :, None, None]
    return beta * gate + x


if __name__ == "__main__":
    B, C, H, W = 2, 16, 16, 16
    # channel=16 -> t = int(abs((log2(16)+1)/2)) = 2 (even) -> k = 3
    t = int(abs((log(C, 2) + 1) / 2))
    k = t if t % 2 else t + 1

    key = jax.random.PRNGKey(0)
    kx, ke, kw = jax.random.split(key, 3)
    x1 = jax.random.normal(kx, (B, C, H, W), jnp.float32)
    edge = jax.random.normal(ke, (B, C, H, W), jnp.float32)
    conv_w = jax.random.normal(kw, (k,), jnp.float32) * 0.1  # Conv1d(1,1,k,bias=False) weight
    beta = jnp.float32(1.0)                                  # nn.Parameter(torch.ones(1))

    # Band matrix (with avg-pool mean folded in) is prepared once, outside the forward.
    band_scaled = prepare_ldm_band(conv_w, C, H * W)

    fwd = jax.jit(ldm_forward)
    out = jax.block_until_ready(fwd(x1, edge, band_scaled, beta))
    ref = jax.block_until_ready(ldm_reference(x1, edge, conv_w, beta))
    assert out.shape == (B, C, H, W)
    assert jnp.allclose(out, ref, atol=1e-5, rtol=1e-5)
    print("KERNEL_OK")
</pallas_src>

<mosaic_0001>
module attributes {stable_mosaic.version = 11 : i64} {
  func.func @ldm_kernel(%arg0: memref<1xf32, #tpu.memory_space<smem>>, %arg1: memref<2x16x256xf32, #tpu.memory_space<vmem>>, %arg2: memref<2x16x256xf32, #tpu.memory_space<vmem>>, %arg3: memref<16x16xf32, #tpu.memory_space<vmem>>, %arg4: memref<2x16x256xf32, #tpu.memory_space<vmem>>) attributes {dimension_semantics = [], scalar_prefetch = 0 : i64, scratch_operands = 0 : i64, tpu.core_type = #tpu.core_type<tc>} {
    %c0 = arith.constant 0 : index
    %c0_0 = arith.constant 0 : index
    %c0_1 = arith.constant 0 : index
    %0 = vector.load %arg1[%c0, %c0_0, %c0_1] : memref<2x16x256xf32, #tpu.memory_space<vmem>>, vector<2x16x256xf32>
    %c0_2 = arith.constant 0 : index
    %c0_3 = arith.constant 0 : index
    %c0_4 = arith.constant 0 : index
    %1 = vector.load %arg2[%c0_2, %c0_3, %c0_4] : memref<2x16x256xf32, #tpu.memory_space<vmem>>, vector<2x16x256xf32>
    %2 = arith.addf %0, %1 : vector<2x16x256xf32>
    %cst = arith.constant dense<0.000000e+00> : vector<2x16xf32>
    %3 = vector.multi_reduction <add>, %2, %cst [2] : vector<2x16x256xf32> to vector<2x16xf32>
    %c0_5 = arith.constant 0 : index
    %c0_6 = arith.constant 0 : index
    %4 = vector.load %arg3[%c0_5, %c0_6] : memref<16x16xf32, #tpu.memory_space<vmem>>, vector<16x16xf32>
    %cst_7 = arith.constant dense<0.000000e+00> : vector<2x16xf32>
    %5 = tpu.matmul %3, %4, %cst_7 {dimension_numbers = #tpu.dot_dimension_numbers<[1], [0], [0], [1], [0, 0, 1, 1], [], []>} : vector<2x16xf32>, vector<16x16xf32>, vector<2x16xf32> -> vector<2x16xf32>
    %6 = arith.negf %5 : vector<2x16xf32>
    %7 = math.exp %6 : vector<2x16xf32>
    %cst_8 = arith.constant 1.000000e+00 : f32
    %8 = vector.broadcast %cst_8 : f32 to vector<2x16xf32>
    %9 = arith.addf %8, %7 : vector<2x16xf32>
    %10 = arith.divf %8, %9 : vector<2x16xf32>
    %c0_9 = arith.constant 0 : index
    %11 = memref.load %arg0[%c0_9] : memref<1xf32, #tpu.memory_space<smem>>
    %12 = vector.shape_cast %10 : vector<2x16xf32> to vector<2x16x1xf32>
    %13 = vector.broadcast %11 : f32 to vector<2x16x1xf32>
    %14 = arith.mulf %13, %12 : vector<2x16x1xf32>
    %15 = vector.broadcast %14 : vector<2x16x1xf32> to vector<2x16x256xf32>
    %16 = arith.addf %15, %2 : vector<2x16x256xf32>
    %c0_10 = arith.constant 0 : index
    %c0_11 = arith.constant 0 : index
    %c0_12 = arith.constant 0 : index
    %17 = vector.load %arg4[%c0_10, %c0_11, %c0_12] : memref<2x16x256xf32, #tpu.memory_space<vmem>>, vector<2x16x256xf32>
    tpu.vector_store %arg4[%c0_10, %c0_11, %c0_12], %16 {strides = array<i32>} : memref<2x16x256xf32, #tpu.memory_space<vmem>>, vector<2x16x256xf32>,
    return
  }
}

</mosaic_0001>

<bundles_post_ra>
// kernel: ldm_forward.1
= control target key start
LH: loop header
LB: loop body
LE: loop exit
PB: predicated region body
PF: predicated region fallthrough
CT: control target
= control target key end

     0   :  { %v60_v30 = vlaneseq  ;;  %vm65_vm0 = vcmask 130112   ;;  %vm70_vm1 = vcmask 1041409   ;;  %vm72_vm2 = vcmask 130048   ;;  %s315_s1 = inlined_call_operand.vmem [shape: f32[2,16,256], index: 1, kind: input, shape index: {}]   ;;  %s316_s2 = inlined_call_operand.vmem [shape: f32[2,16,256], index: 2, kind: input, shape index: {}]   ;;  %s317_s3 = inlined_call_operand.vmem [shape: f32[16,16], index: 3, kind: input, shape index: {}]   ;;  %s318_s0 = inlined_call_operand.<no memory space> [shape: f32[1], index: 0, kind: input, shape index: {}]   ;;  %s319_s4 = inlined_call_operand.vmem [shape: f32[2,16,256], index: 4, kind: output, shape index: {}]  }
   0x1   :  { %v22_v0 = vld [vmem:[%s315_s1 + $0x20] sm:$0xff]  ;;  %v23_v1 = vld [vmem:[%s315_s1 + $0x28] sm:$0xff]  ;;  %v24_v10 = vld [vmem:[%s315_s1 + $0x30] sm:$0xff]  ;;  %v141_v62 = vstv %s318_s0 }
   0x2   :  { %v30_v2 = vld [vmem:[%s316_s2 + $0x20] sm:$0xff]  ;;  %v31_v3 = vld [vmem:[%s316_s2 + $0x28] sm:$0xff]  ;;  %v25_v13 = vld [vmem:[%s315_s1 + $0x38] sm:$0xff]  ;;  %v61_v33 = vand.u32 127, %v60_v30  ;;  %v117_v44 = vshrl.u32 %v60_v30, 7 }
   0x3   :  { %v214_v4 = vadd.f32 %v30_v2, %v22_v0  ;;  %v18_v5 = vld [vmem:[%s315_s1] sm:$0xff]  ;;  %v19_v6 = vld [vmem:[%s315_s1 + $0x8] sm:$0xff]  ;;  %v222_v7 = vadd.f32 %v31_v3, %v23_v1  ;;  %v32_v14 = vld [vmem:[%s316_s2 + $0x30] sm:$0xff] }
   0x4   :  { %v26_v8 = vld [vmem:[%s316_s2] sm:$0xff]  ;;  %v27_v9 = vld [vmem:[%s316_s2 + $0x8] sm:$0xff]  ;;  %v33_v15 = vld [vmem:[%s316_s2 + $0x38] sm:$0xff]  ;;  %v262_v22 = vadd.f32 %v32_v14, %v24_v10  ;;  %v63_v34 = vadd.s32 4294967288, %v61_v33  ;;  %170 = vset.pattern.permute.xlu0 %v117_v44  ;;  %168 = vset.pattern.permute.xlu2 %v117_v44  ;;  %v124_v45 = vadd.s32 8, %v117_v44 }
   0x5   :  { %v233_v11 = vadd.f32 %v26_v8, %v18_v5  ;;  %v235_v12 = vadd.f32 %v27_v9, %v19_v6  ;;  %v48_v16 = vadd.f32 %v222_v7, %v214_v4  ;;  %v20_v17 = vld [vmem:[%s315_s1 + $0x10] sm:$0xff]  ;;  %v21_v18 = vld [vmem:[%s315_s1 + $0x18] sm:$0xff]  ;;  %v264_v23 = vadd.f32 %v33_v15, %v25_v13  ;;  %v55_v28 = vld [vmem:[%s317_s3 + $0x8] sm:$0xff] }
   0x6   :  { %v28_v19 = vld [vmem:[%s316_s2 + $0x10] sm:$0xff]  ;;  %v29_v21 = vld [vmem:[%s316_s2 + $0x18] sm:$0xff]  ;;  %v54_v29 = vld [vmem:[%s317_s3] sm:$0xff]  ;;  %89 = vmatpush.msra.mxu0 %v55_v28  ;;  %171 = vset.pattern.permute.xlu1 %v124_v45 }
   0x7   :  { %v42_v20 = vadd.f32 %v235_v12, %v233_v11  ;;  %49 = vadd.xlane.f32.xlu1 %v48_v16  ;;  %v266_v24 = vadd.f32 %v28_v19, %v20_v17  ;;  %v268_v25 = vadd.f32 %v29_v21, %v21_v18  ;;  %v51_v26 = vadd.f32 %v264_v23, %v262_v22 }
   0x8   :  { %90 = vmatpush.msra.mxu0 %v54_v29 }
   0x9   :  { %43 = vadd.xlane.f32.xlu0 %v42_v20  ;;  %v45_v27 = vadd.f32 %v268_v25, %v266_v24 }
   0xf   :  { %52 = vadd.xlane.f32.xlu1 %v51_v26 }
  0x11   :  { %46 = vadd.xlane.f32.xlu0 %v45_v27 }
  0x7a   :  { %v50_v31 = vpop.xlane.xlu1 %49 }
  0x7b   :  { %v67_v36 = vperm.slane %v50_v31, %v61_v33 }
  0x7c   :  { %v44_v32 = vpop.xlane.xlu0 %43 }
  0x7d   :  { %v62_v39 = vperm.slane %v44_v32, %v61_v33 }
  0x82   :  { %v53_v35 = vpop.xlane.xlu1 %52 }
  0x83   :  { %v68_v37 = vperm.slane %v53_v35, %v63_v34 }
  0x84   :  { %v47_v38 = vpop.xlane.xlu0 %46 }
  0x85   :  { %v64_v40 = vperm.slane %v47_v38, %v63_v34  ;;  %v69_v41 = vsel %vm65_vm0, %v68_v37, %v67_v36 }
  0x87   :  { %v66_v42 = vsel %vm65_vm0, %v64_v40, %v62_v39 }
  0x88   :  { %v71_v43 = vsel %vm70_vm1, %v69_v41, %v66_v42 }
  0x89   :  { %166 = vmatmul.msk.f32.vlgmr.msra.gmra.mxu0 %vm72_vm2, %v71_v43 }
 0x106   :  { %v92_v46 = vpop.f32.mrf.mxu0 }
 0x107   :  { %v167_v47 = vmul.f32 -1.442695, %v92_v46 }
 0x109   :  { %173 = vpow2.f32 %v167_v47 }
 0x10f   :  { %v174_v48 = vpop.eup %173 }
 0x110   :  { %v98_v49 = vadd.f32 1.0, %v174_v48 }
 0x112   :  { %175 = vrcp.f32 %v98_v49  ;;  %v110_v53 = vand.u32 2147483648, %v98_v49  ;;  %v108_v55 = vand.u32 2147483647, %v98_v49  ;;  %vm104_vm4 = vweird.f32 %v98_v49 }
 0x114   :  { %v111_v57 = vor.u32 1.1754944e-38, %v110_v53  ;;  %vm109_vm6 = vcmp.eq.f32.partialorder %v108_v55, 8.507059e+37 }
 0x118   :  { %v176_v50 = vpop.eup %175 }
 0x119   :  { %v100_v51 = vmul.f32 %v176_v50, %v98_v49  ;;  %vm105_vm3 = vweird.f32 %v176_v50 }
 0x11a   :  { %vm106_vm5 = vmor %vm104_vm4, %vm105_vm3 }
 0x11b   :  { %v101_v52 = vsub.f32 1.0, %v100_v51 }
 0x11d   :  { %v102_v54 = vmul.f32 %v176_v50, %v101_v52 }
 0x11f   :  { %v103_v56 = vadd.f32 %v176_v50, %v102_v54 }
 0x121   :  { %v107_v58 = vsel %vm106_vm5, %v176_v50, %v103_v56 }
 0x122   :  { %v112_v59 = vsel %vm109_vm6, %v111_v57, %v107_v58 }
 0x123   :  { %v128_v60 = vperm.slane %v112_v59, 1  ;;  %v115_v61 = vperm.slane %v112_v59, 0 }
 0x125   :  { %139 = vperm.xlu1 %171, %v128_v60   ;;  %133 = vperm.xlu0 %170, %v128_v60  }
 0x126   :  { %120 = vperm.xlu2 %168, %v115_v61  }
 0x12d   :  { %172 = vset.pattern.permute.xlu0 %v124_v45 }
 0x12e   :  { %169 = vset.pattern.permute.xlu2 %v124_v45 }
 0x136   :  { %126 = vperm.xlu2 %169, %v115_v61  }
 0x180   :  { %v121_v63 = vpop.permute.xlu2 %120 }
 0x181   :  { %v142_v0 = vmul.f32 %v141_v62, %v121_v63 }
 0x183   :  { %v146_v1 = vadd.f32 %v142_v0, %v233_v11  ;;  %v147_v2 = vadd.f32 %v142_v0, %v235_v12 }
 0x185   :  { %154 = vst [vmem:[%s319_s4] sm:$0xff] %v146_v1 }
 0x186   :  { %155 = vst [vmem:[%s319_s4 + $0x8] sm:$0xff] %v147_v2 }
 0x190   :  { %v127_v3 = vpop.permute.xlu2 %126 }
 0x191   :  { %v143_v5 = vmul.f32 %v141_v62, %v127_v3 }
 0x193   :  { %v148_v6 = vadd.f32 %v143_v5, %v266_v24  ;;  %v149_v8 = vadd.f32 %v143_v5, %v268_v25 }
 0x195   :  { %156 = vst [vmem:[%s319_s4 + $0x10] sm:$0xff] %v148_v6 }
 0x196   :  { %157 = vst [vmem:[%s319_s4 + $0x18] sm:$0xff] %v149_v8 }
 0x197   :  { %v140_v9 = vpop.permute.xlu1 %139  ;;  %v134_v10 = vpop.permute.xlu0 %133 }
 0x198   :  { %v145_v11 = vmul.f32 %v141_v62, %v140_v9  ;;  %v144_v12 = vmul.f32 %v141_v62, %v134_v10 }
 0x19a   :  { %v152_v13 = vadd.f32 %v145_v11, %v262_v22  ;;  %v153_v14 = vadd.f32 %v145_v11, %v264_v23  ;;  %v150_v15 = vadd.f32 %v144_v12, %v214_v4  ;;  %v151_v16 = vadd.f32 %v144_v12, %v222_v7 }
 0x19c   :  { %160 = vst [vmem:[%s319_s4 + $0x30] sm:$0xff] %v152_v13 }
 0x19d   :  { %161 = vst [vmem:[%s319_s4 + $0x38] sm:$0xff] %v153_v14 }
 0x19e   :  { %158 = vst [vmem:[%s319_s4 + $0x20] sm:$0xff] %v150_v15 }
 0x19f   :  { %159 = vst [vmem:[%s319_s4 + $0x28] sm:$0xff] %v151_v16 }

</bundles_post_ra>
